<compile_context>
chip_gen: v6e
topology: v6e:2x2x1
jax: 0.10.0
libtpu: 0.0.40
codegen_flags: <defaults>
</compile_context>

<pallas_src>
import math

import jax
import jax.numpy as jnp
from jax import lax
from jax.experimental import pallas as pl
from jax.experimental.pallas import tpu as pltpu  # noqa: F401  (kept for the scale-up tiling path)

# ----------------------------- configuration --------------------------------
B = 2            # batch
S = 8            # sequence length
H = 32           # hidden size
NH = 4           # attention heads (MHA: kv heads == q heads)
HD = H // NH     # head dim
FF = 4 * H       # MLP intermediate size
T = B * S        # flattened (batch * seq) rows
EPS = 1e-5       # layer_norm_epsilon

MASK_VALUE = -0.7 * float(jnp.finfo(jnp.float32).max)   # fp32-safe mask fill


def _layernorm(x, gamma, beta):
    # two-pass variance (E[(x-mu)^2]) — safer than E[x^2]-E[x]^2 when the
    # residual stream develops a large mean (review correctness note)
    mu = jnp.mean(x, axis=-1, keepdims=True)
    xc = x - mu
    var = jnp.mean(xc * xc, axis=-1, keepdims=True)
    return xc * lax.rsqrt(var + EPS) * gamma + beta


# ------------------------------- kernel --------------------------------------
def gpt_block_kernel(
    x_ref,                        # [T, H]     f32  flattened (batch*seq, hidden)
    bias_ref,                     # [T, T]     f32  additive causal+batch mask (0 / MASK_VALUE)
    ln1_g_ref, ln1_b_ref,         # [1, H]     f32
    wqkv_ref,                     # [H, 3H]    bf16 (Q columns pre-scaled by 1/sqrt(HD))
    bqkv_ref,                     # [1, 3H]    f32  (Q columns pre-scaled)
    wo_ref,                       # [H, H]     bf16
    bo_ref,                       # [1, H]     f32
    ln2_g_ref, ln2_b_ref,         # [1, H]     f32
    wfc_ref,                      # [H, FF]    bf16
    bfc_ref,                      # [1, FF]    f32
    wproj_ref,                    # [FF, H]    bf16
    bproj_ref,                    # [1, H]     f32
    out_ref,                      # [T, H]     f32
):
    f32 = jnp.float32
    bf16 = jnp.bfloat16

    x = x_ref[...]                                                    # [T, H] f32

    # ---- LayerNorm 1 ----
    h = _layernorm(x, ln1_g_ref[...], ln1_b_ref[...])                 # [T, H] f32

    # ---- fused QKV projection: single [T,H]@[H,3H] bf16 matmul, fp32 acc ----
    qkv = jnp.dot(h.astype(bf16), wqkv_ref[...],
                  preferred_element_type=f32) + bqkv_ref[...]         # [T, 3H] f32
    qkvb = qkv.astype(bf16)                                           # MXU operands only

    # per-head views via static lane slices (no matmuls, no replication)
    def split_heads(base):
        return jnp.stack(
            [qkvb[:, base + n * HD: base + (n + 1) * HD] for n in range(NH)],
            axis=0)                                                   # [NH, T, HD] bf16

    q = split_heads(0)
    k = split_heads(H)
    v = split_heads(2 * H)

    # ---- causal SDPA over all heads / both batch elements at once ----
    scores = jnp.einsum("nqd,nkd->nqk", q, k,
                        preferred_element_type=f32)                   # [NH, T, T] f32
    scores = scores + bias_ref[...][None, :, :]                       # precomputed mask bias
    m = jnp.max(scores, axis=-1, keepdims=True)
    p = jnp.exp(scores - m)                                           # unnormalized probs
    l = jnp.sum(p, axis=-1, keepdims=True)                            # [NH, T, 1]

    # deferred softmax normalization: scale the [NH,T,HD] output, not [NH,T,T]
    attn = jnp.einsum("nqk,nkd->nqd", p.astype(bf16), v,
                      preferred_element_type=f32)                     # [NH, T, HD] f32
    attn = attn * pl.reciprocal(l, approx=True)

    # ---- lane-pack heads -> [T, NH*HD] = [T, H] and single output projection ----
    attn2d = jnp.concatenate([attn[n] for n in range(NH)], axis=-1)   # [T, H] f32, lane-dense
    h1 = x + jnp.dot(attn2d.astype(bf16), wo_ref[...],
                     preferred_element_type=f32) + bo_ref[...]        # attn dropout = identity (eval)

    # ---- LayerNorm 2 ----
    g = _layernorm(h1, ln2_g_ref[...], ln2_b_ref[...])                # [T, H] f32

    # ---- MLP: c_fc -> gelu -> (dropout identity) -> c_proj ----
    ff = jnp.dot(g.astype(bf16), wfc_ref[...],
                 preferred_element_type=f32) + bfc_ref[...]           # [T, FF] f32
    # TODO(synk): switch to jax.nn.gelu(..., approximate=False) if the module's
    # ACT2FN resolves to exact-erf GELU; tanh approximation used here.
    ff = jax.nn.gelu(ff)
    ff = jnp.dot(ff.astype(bf16), wproj_ref[...],
                 preferred_element_type=f32) + bproj_ref[...]         # [T, H] f32

    out_ref[...] = h1 + ff                                            # resid dropout = identity (eval)


# --------------------- one-time parameter / constant prep ---------------------
def prepare_params(params):
    """Hoisted weight layout/cast prep — run ONCE at load time, not per call."""
    (ln1_g, ln1_b, wqkv, bqkv, wo, bo, ln2_g, ln2_b, wfc, bfc, wproj, bproj) = params
    bf16 = jnp.bfloat16
    scale = 1.0 / math.sqrt(HD)

    # fold 1/sqrt(HD) into the Q columns of the fused QKV weight and bias (free)
    col_scale = jnp.concatenate(
        [jnp.full((H,), scale, jnp.float32), jnp.ones((2 * H,), jnp.float32)])
    wqkv_s = (wqkv * col_scale[None, :]).astype(bf16)                 # [H, 3H] bf16
    bqkv_s = (bqkv * col_scale[None, :]).astype(jnp.float32)          # [1, 3H] f32

    # combined causal + same-batch-block additive mask, built once ([T,T] const)
    idx = jnp.arange(T)
    same_batch = (idx[:, None] // S) == (idx[None, :] // S)
    causal = idx[None, :] <= idx[:, None]
    mask_bias = jnp.where(same_batch & causal, 0.0, MASK_VALUE).astype(jnp.float32)

    return (
        mask_bias,
        ln1_g, ln1_b,
        wqkv_s, bqkv_s,
        wo.astype(bf16), bo,
        ln2_g, ln2_b,
        wfc.astype(bf16), bfc,
        wproj.astype(bf16), bproj,
    )


# ------------------------------- wrapper --------------------------------------
@jax.jit
def gpt_block(x, prep):
    x2d = x.reshape(T, H)                                             # fold batch into the row axis
    out2d = pl.pallas_call(
        gpt_block_kernel,
        out_shape=jax.ShapeDtypeStruct((T, H), jnp.float32),
        # no grid: one invocation, every operand is a single full-array VMEM block
        # (no per-step pipeline overhead, no double-buffering of the constants).
    )(x2d, *prep)
    return out2d.reshape(B, S, H)


# ---------------------------- pure-JAX reference ------------------------------
def gpt_block_ref(x, params):
    (ln1_g, ln1_b, wqkv, bqkv, wo, bo, ln2_g, ln2_b, wfc, bfc, wproj, bproj) = params

    def ln(v, g, b):
        mu = jnp.mean(v, axis=-1, keepdims=True)
        var = jnp.mean((v - mu) ** 2, axis=-1, keepdims=True)
        return (v - mu) / jnp.sqrt(var + EPS) * g[0] + b[0]

    h = ln(x, ln1_g, ln1_b)
    qkv = h @ wqkv + bqkv[0]
    q = qkv[..., :H].reshape(B, S, NH, HD).transpose(0, 2, 1, 3)
    k = qkv[..., H:2 * H].reshape(B, S, NH, HD).transpose(0, 2, 1, 3)
    v = qkv[..., 2 * H:].reshape(B, S, NH, HD).transpose(0, 2, 1, 3)
    scores = jnp.einsum("bhqd,bhkd->bhqk", q, k) / math.sqrt(HD)
    mask = jnp.tril(jnp.ones((S, S), bool))
    scores = jnp.where(mask, scores, -1e30)
    p = jax.nn.softmax(scores, axis=-1)
    attn = jnp.einsum("bhqk,bhkd->bhqd", p, v).transpose(0, 2, 1, 3).reshape(B, S, H)
    h1 = x + attn @ wo + bo[0]
    g = ln(h1, ln2_g, ln2_b)
    ff = jax.nn.gelu(g @ wfc + bfc[0]) @ wproj + bproj[0]
    return h1 + ff


# --------------------------------- main ----------------------------------------
if __name__ == "__main__":
    key = jax.random.PRNGKey(0)
    keys = jax.random.split(key, 12)

    x = jax.random.normal(keys[0], (B, S, H), jnp.float32)

    init = lambda k, shape, s=0.02: (s * jax.random.normal(k, shape)).astype(jnp.float32)
    params = (
        1.0 + init(keys[5], (1, H), 0.05),         # ln1 gamma
        init(keys[6], (1, H)),                     # ln1 beta
        init(keys[1], (H, 3 * H)),                 # Wqkv
        init(keys[7], (1, 3 * H)),                 # bqkv
        init(keys[2], (H, H)),                     # Wo
        init(keys[8], (1, H)),                     # bo
        1.0 + init(keys[9], (1, H), 0.05),         # ln2 gamma
        init(keys[10], (1, H)),                    # ln2 beta
        init(keys[3], (H, FF)),                    # Wfc
        init(keys[11], (1, FF)),                   # bfc
        init(keys[4], (FF, H)),                    # Wproj
        init(keys[6], (1, H)),                     # bproj
    )

    # one-time weight prep (bf16 casts, QKV scale folding, mask) — hoisted out of
    # the per-call jit per review
    prep = jax.tree_util.tree_map(jax.device_put, prepare_params(params))

    out = gpt_block(x, prep)
    out = jax.block_until_ready(out)

    ref = gpt_block_ref(x, params)
    assert out.shape == (B, S, H)
    # tolerance covers bf16 matmul operands + approx softmax reciprocal vs fp32 reference
    assert jnp.allclose(out, ref, rtol=2e-2, atol=2e-2), "mismatch vs pure-JAX reference"

    print("KERNEL_OK")
</pallas_src>

<mosaic_0001>
module attributes {stable_mosaic.version = 11 : i64} {
  func.func @gpt_block_kernel(%arg0: memref<16x32xf32, #tpu.memory_space<vmem>>, %arg1: memref<16x16xf32, #tpu.memory_space<vmem>>, %arg2: memref<1x32xf32, #tpu.memory_space<vmem>>, %arg3: memref<1x32xf32, #tpu.memory_space<vmem>>, %arg4: memref<32x96xbf16, #tpu.memory_space<vmem>>, %arg5: memref<1x96xf32, #tpu.memory_space<vmem>>, %arg6: memref<32x32xbf16, #tpu.memory_space<vmem>>, %arg7: memref<1x32xf32, #tpu.memory_space<vmem>>, %arg8: memref<1x32xf32, #tpu.memory_space<vmem>>, %arg9: memref<1x32xf32, #tpu.memory_space<vmem>>, %arg10: memref<32x128xbf16, #tpu.memory_space<vmem>>, %arg11: memref<1x128xf32, #tpu.memory_space<vmem>>, %arg12: memref<128x32xbf16, #tpu.memory_space<vmem>>, %arg13: memref<1x32xf32, #tpu.memory_space<vmem>>, %arg14: memref<16x32xf32, #tpu.memory_space<vmem>>) attributes {dimension_semantics = [], scalar_prefetch = 0 : i64, scratch_operands = 0 : i64, tpu.core_type = #tpu.core_type<tc>} {
    %c0 = arith.constant 0 : index
    %c0_0 = arith.constant 0 : index
    %0 = vector.load %arg0[%c0, %c0_0] : memref<16x32xf32, #tpu.memory_space<vmem>>, vector<16x32xf32>
    %c0_1 = arith.constant 0 : index
    %c0_2 = arith.constant 0 : index
    %1 = vector.load %arg2[%c0_1, %c0_2] : memref<1x32xf32, #tpu.memory_space<vmem>>, vector<1x32xf32>
    %c0_3 = arith.constant 0 : index
    %c0_4 = arith.constant 0 : index
    %2 = vector.load %arg3[%c0_3, %c0_4] : memref<1x32xf32, #tpu.memory_space<vmem>>, vector<1x32xf32>
    %cst = arith.constant dense<0.000000e+00> : vector<16xf32>
    %3 = vector.multi_reduction <add>, %0, %cst [1] : vector<16x32xf32> to vector<16xf32>
    %4 = vector.shape_cast %3 : vector<16xf32> to vector<16x1xf32>
    %cst_5 = arith.constant 3.200000e+01 : f32
    %5 = vector.broadcast %cst_5 : f32 to vector<16x1xf32>
    %6 = arith.divf %4, %5 : vector<16x1xf32>
    %7 = vector.broadcast %6 : vector<16x1xf32> to vector<16x32xf32>
    %8 = arith.subf %0, %7 : vector<16x32xf32>
    %9 = arith.mulf %8, %8 : vector<16x32xf32>
    %cst_6 = arith.constant dense<0.000000e+00> : vector<16xf32>
    %10 = vector.multi_reduction <add>, %9, %cst_6 [1] : vector<16x32xf32> to vector<16xf32>
    %11 = vector.shape_cast %10 : vector<16xf32> to vector<16x1xf32>
    %cst_7 = arith.constant 3.200000e+01 : f32
    %12 = vector.broadcast %cst_7 : f32 to vector<16x1xf32>
    %13 = arith.divf %11, %12 : vector<16x1xf32>
    %cst_8 = arith.constant 9.99999974E-6 : f32
    %14 = vector.broadcast %cst_8 : f32 to vector<16x1xf32>
    %15 = arith.addf %13, %14 : vector<16x1xf32>
    %16 = math.rsqrt %15 : vector<16x1xf32>
    %17 = vector.broadcast %16 : vector<16x1xf32> to vector<16x32xf32>
    %18 = arith.mulf %8, %17 : vector<16x32xf32>
    %19 = vector.broadcast %1 : vector<1x32xf32> to vector<16x32xf32>
    %20 = arith.mulf %18, %19 : vector<16x32xf32>
    %21 = vector.broadcast %2 : vector<1x32xf32> to vector<16x32xf32>
    %22 = arith.addf %20, %21 : vector<16x32xf32>
    %23 = arith.truncf %22 : vector<16x32xf32> to vector<16x32xbf16>
    %c0_9 = arith.constant 0 : index
    %c0_10 = arith.constant 0 : index
    %24 = vector.load %arg4[%c0_9, %c0_10] : memref<32x96xbf16, #tpu.memory_space<vmem>>, vector<32x96xbf16>
    %cst_11 = arith.constant dense<0.000000e+00> : vector<16x96xf32>
    %25 = tpu.matmul %23, %24, %cst_11 {dimension_numbers = #tpu.dot_dimension_numbers<[1], [0], [0], [1], [0, 0, 1, 1], [], []>} : vector<16x32xbf16>, vector<32x96xbf16>, vector<16x96xf32> -> vector<16x96xf32>
    %c0_12 = arith.constant 0 : index
    %c0_13 = arith.constant 0 : index
    %26 = vector.load %arg5[%c0_12, %c0_13] : memref<1x96xf32, #tpu.memory_space<vmem>>, vector<1x96xf32>
    %27 = vector.broadcast %26 : vector<1x96xf32> to vector<16x96xf32>
    %28 = arith.addf %25, %27 : vector<16x96xf32>
    %29 = arith.truncf %28 : vector<16x96xf32> to vector<16x96xbf16>
    %30 = vector.extract_strided_slice %29 {offsets = [0, 0], sizes = [16, 8], strides = [1, 1]} : vector<16x96xbf16> to vector<16x8xbf16>
    %31 = vector.extract_strided_slice %29 {offsets = [0, 8], sizes = [16, 8], strides = [1, 1]} : vector<16x96xbf16> to vector<16x8xbf16>
    %32 = vector.extract_strided_slice %29 {offsets = [0, 16], sizes = [16, 8], strides = [1, 1]} : vector<16x96xbf16> to vector<16x8xbf16>
    %33 = vector.extract_strided_slice %29 {offsets = [0, 24], sizes = [16, 8], strides = [1, 1]} : vector<16x96xbf16> to vector<16x8xbf16>
    %34 = vector.shape_cast %30 : vector<16x8xbf16> to vector<1x16x8xbf16>
    %35 = vector.shape_cast %31 : vector<16x8xbf16> to vector<1x16x8xbf16>
    %36 = vector.shape_cast %32 : vector<16x8xbf16> to vector<1x16x8xbf16>
    %37 = vector.shape_cast %33 : vector<16x8xbf16> to vector<1x16x8xbf16>
    %38 = tpu.concatenate %34, %35, %36, %37 in 0 : vector<1x16x8xbf16>, vector<1x16x8xbf16>, vector<1x16x8xbf16>, vector<1x16x8xbf16> -> vector<4x16x8xbf16>
    %39 = vector.extract_strided_slice %29 {offsets = [0, 32], sizes = [16, 8], strides = [1, 1]} : vector<16x96xbf16> to vector<16x8xbf16>
    %40 = vector.extract_strided_slice %29 {offsets = [0, 40], sizes = [16, 8], strides = [1, 1]} : vector<16x96xbf16> to vector<16x8xbf16>
    %41 = vector.extract_strided_slice %29 {offsets = [0, 48], sizes = [16, 8], strides = [1, 1]} : vector<16x96xbf16> to vector<16x8xbf16>
    %42 = vector.extract_strided_slice %29 {offsets = [0, 56], sizes = [16, 8], strides = [1, 1]} : vector<16x96xbf16> to vector<16x8xbf16>
    %43 = vector.shape_cast %39 : vector<16x8xbf16> to vector<1x16x8xbf16>
    %44 = vector.shape_cast %40 : vector<16x8xbf16> to vector<1x16x8xbf16>
    %45 = vector.shape_cast %41 : vector<16x8xbf16> to vector<1x16x8xbf16>
    %46 = vector.shape_cast %42 : vector<16x8xbf16> to vector<1x16x8xbf16>
    %47 = tpu.concatenate %43, %44, %45, %46 in 0 : vector<1x16x8xbf16>, vector<1x16x8xbf16>, vector<1x16x8xbf16>, vector<1x16x8xbf16> -> vector<4x16x8xbf16>
    %48 = vector.extract_strided_slice %29 {offsets = [0, 64], sizes = [16, 8], strides = [1, 1]} : vector<16x96xbf16> to vector<16x8xbf16>
    %49 = vector.extract_strided_slice %29 {offsets = [0, 72], sizes = [16, 8], strides = [1, 1]} : vector<16x96xbf16> to vector<16x8xbf16>
    %50 = vector.extract_strided_slice %29 {offsets = [0, 80], sizes = [16, 8], strides = [1, 1]} : vector<16x96xbf16> to vector<16x8xbf16>
    %51 = vector.extract_strided_slice %29 {offsets = [0, 88], sizes = [16, 8], strides = [1, 1]} : vector<16x96xbf16> to vector<16x8xbf16>
    %52 = vector.shape_cast %48 : vector<16x8xbf16> to vector<1x16x8xbf16>
    %53 = vector.shape_cast %49 : vector<16x8xbf16> to vector<1x16x8xbf16>
    %54 = vector.shape_cast %50 : vector<16x8xbf16> to vector<1x16x8xbf16>
    %55 = vector.shape_cast %51 : vector<16x8xbf16> to vector<1x16x8xbf16>
    %56 = tpu.concatenate %52, %53, %54, %55 in 0 : vector<1x16x8xbf16>, vector<1x16x8xbf16>, vector<1x16x8xbf16>, vector<1x16x8xbf16> -> vector<4x16x8xbf16>
    "tpu.trace_start"() <{level = 10 : i32, message = "nqd,nkd->nqk"}> : () -> ()
    %cst_14 = arith.constant dense<0.000000e+00> : vector<4x16x16xf32>
    %57 = tpu.matmul %38, %47, %cst_14 {dimension_numbers = #tpu.dot_dimension_numbers<[2], [2], [1], [1], [0, 0, 0, 1, 1, 1], [0], [0]>} : vector<4x16x8xbf16>, vector<4x16x8xbf16>, vector<4x16x16xf32> -> vector<4x16x16xf32>
    "tpu.trace_stop"() : () -> ()
    %c0_15 = arith.constant 0 : index
    %c0_16 = arith.constant 0 : index
    %58 = vector.load %arg1[%c0_15, %c0_16] : memref<16x16xf32, #tpu.memory_space<vmem>>, vector<16x16xf32>
    %59 = vector.shape_cast %58 : vector<16x16xf32> to vector<1x16x16xf32>
    %60 = vector.broadcast %59 : vector<1x16x16xf32> to vector<4x16x16xf32>
    %61 = arith.addf %57, %60 : vector<4x16x16xf32>
    %cst_17 = arith.constant dense<0xFF800000> : vector<4x16xf32>
    %62 = vector.multi_reduction <maximumf>, %61, %cst_17 [2] : vector<4x16x16xf32> to vector<4x16xf32>
    %63 = vector.shape_cast %62 : vector<4x16xf32> to vector<4x16x1xf32>
    %64 = vector.broadcast %63 : vector<4x16x1xf32> to vector<4x16x16xf32>
    %65 = arith.subf %61, %64 : vector<4x16x16xf32>
    %66 = math.exp %65 : vector<4x16x16xf32>
    %cst_18 = arith.constant dense<0.000000e+00> : vector<4x16xf32>
    %67 = vector.multi_reduction <add>, %66, %cst_18 [2] : vector<4x16x16xf32> to vector<4x16xf32>
    %68 = vector.shape_cast %67 : vector<4x16xf32> to vector<4x16x1xf32>
    %69 = arith.truncf %66 : vector<4x16x16xf32> to vector<4x16x16xbf16>
    "tpu.trace_start"() <{level = 10 : i32, message = "nqk,nkd->nqd"}> : () -> ()
    %cst_19 = arith.constant dense<0.000000e+00> : vector<4x16x8xf32>
    %70 = tpu.matmul %69, %56, %cst_19 {dimension_numbers = #tpu.dot_dimension_numbers<[2], [1], [1], [2], [0, 0, 0, 1, 1, 2], [0], [0]>} : vector<4x16x16xbf16>, vector<4x16x8xbf16>, vector<4x16x8xf32> -> vector<4x16x8xf32>
    "tpu.trace_stop"() : () -> ()
    %71 = tpu.reciprocal %68 {approx = true} : vector<4x16x1xf32> -> vector<4x16x1xf32>
    %72 = vector.broadcast %71 : vector<4x16x1xf32> to vector<4x16x8xf32>
    %73 = arith.mulf %70, %72 : vector<4x16x8xf32>
    %74 = vector.extract_strided_slice %73 {offsets = [0, 0, 0], sizes = [1, 16, 8], strides = [1, 1, 1]} : vector<4x16x8xf32> to vector<1x16x8xf32>
    %75 = vector.shape_cast %74 : vector<1x16x8xf32> to vector<16x8xf32>
    %76 = vector.extract_strided_slice %73 {offsets = [1, 0, 0], sizes = [1, 16, 8], strides = [1, 1, 1]} : vector<4x16x8xf32> to vector<1x16x8xf32>
    %77 = vector.shape_cast %76 : vector<1x16x8xf32> to vector<16x8xf32>
    %78 = vector.extract_strided_slice %73 {offsets = [2, 0, 0], sizes = [1, 16, 8], strides = [1, 1, 1]} : vector<4x16x8xf32> to vector<1x16x8xf32>
    %79 = vector.shape_cast %78 : vector<1x16x8xf32> to vector<16x8xf32>
    %80 = vector.extract_strided_slice %73 {offsets = [3, 0, 0], sizes = [1, 16, 8], strides = [1, 1, 1]} : vector<4x16x8xf32> to vector<1x16x8xf32>
    %81 = vector.shape_cast %80 : vector<1x16x8xf32> to vector<16x8xf32>
    %82 = tpu.concatenate %75, %77, %79, %81 in 1 : vector<16x8xf32>, vector<16x8xf32>, vector<16x8xf32>, vector<16x8xf32> -> vector<16x32xf32>
    %83 = arith.truncf %82 : vector<16x32xf32> to vector<16x32xbf16>
    %c0_20 = arith.constant 0 : index
    %c0_21 = arith.constant 0 : index
    %84 = vector.load %arg6[%c0_20, %c0_21] : memref<32x32xbf16, #tpu.memory_space<vmem>>, vector<32x32xbf16>
    %cst_22 = arith.constant dense<0.000000e+00> : vector<16x32xf32>
    %85 = tpu.matmul %83, %84, %cst_22 {dimension_numbers = #tpu.dot_dimension_numbers<[1], [0], [0], [1], [0, 0, 1, 1], [], []>} : vector<16x32xbf16>, vector<32x32xbf16>, vector<16x32xf32> -> vector<16x32xf32>
    %86 = arith.addf %0, %85 : vector<16x32xf32>
    %c0_23 = arith.constant 0 : index
    %c0_24 = arith.constant 0 : index
    %87 = vector.load %arg7[%c0_23, %c0_24] : memref<1x32xf32, #tpu.memory_space<vmem>>, vector<1x32xf32>
    %88 = vector.broadcast %87 : vector<1x32xf32> to vector<16x32xf32>
    %89 = arith.addf %86, %88 : vector<16x32xf32>
    %c0_25 = arith.constant 0 : index
    %c0_26 = arith.constant 0 : index
    %90 = vector.load %arg8[%c0_25, %c0_26] : memref<1x32xf32, #tpu.memory_space<vmem>>, vector<1x32xf32>
    %c0_27 = arith.constant 0 : index
    %c0_28 = arith.constant 0 : index
    %91 = vector.load %arg9[%c0_27, %c0_28] : memref<1x32xf32, #tpu.memory_space<vmem>>, vector<1x32xf32>
    %cst_29 = arith.constant dense<0.000000e+00> : vector<16xf32>
    %92 = vector.multi_reduction <add>, %89, %cst_29 [1] : vector<16x32xf32> to vector<16xf32>
    %93 = vector.shape_cast %92 : vector<16xf32> to vector<16x1xf32>
    %cst_30 = arith.constant 3.200000e+01 : f32
    %94 = vector.broadcast %cst_30 : f32 to vector<16x1xf32>
    %95 = arith.divf %93, %94 : vector<16x1xf32>
    %96 = vector.broadcast %95 : vector<16x1xf32> to vector<16x32xf32>
    %97 = arith.subf %89, %96 : vector<16x32xf32>
    %98 = arith.mulf %97, %97 : vector<16x32xf32>
    %cst_31 = arith.constant dense<0.000000e+00> : vector<16xf32>
    %99 = vector.multi_reduction <add>, %98, %cst_31 [1] : vector<16x32xf32> to vector<16xf32>
    %100 = vector.shape_cast %99 : vector<16xf32> to vector<16x1xf32>
    %cst_32 = arith.constant 3.200000e+01 : f32
    %101 = vector.broadcast %cst_32 : f32 to vector<16x1xf32>
    %102 = arith.divf %100, %101 : vector<16x1xf32>
    %cst_33 = arith.constant 9.99999974E-6 : f32
    %103 = vector.broadcast %cst_33 : f32 to vector<16x1xf32>
    %104 = arith.addf %102, %103 : vector<16x1xf32>
    %105 = math.rsqrt %104 : vector<16x1xf32>
    %106 = vector.broadcast %105 : vector<16x1xf32> to vector<16x32xf32>
    %107 = arith.mulf %97, %106 : vector<16x32xf32>
    %108 = vector.broadcast %90 : vector<1x32xf32> to vector<16x32xf32>
    %109 = arith.mulf %107, %108 : vector<16x32xf32>
    %110 = vector.broadcast %91 : vector<1x32xf32> to vector<16x32xf32>
    %111 = arith.addf %109, %110 : vector<16x32xf32>
    %112 = arith.truncf %111 : vector<16x32xf32> to vector<16x32xbf16>
    %c0_34 = arith.constant 0 : index
    %c0_35 = arith.constant 0 : index
    %113 = vector.load %arg10[%c0_34, %c0_35] : memref<32x128xbf16, #tpu.memory_space<vmem>>, vector<32x128xbf16>
    %cst_36 = arith.constant dense<0.000000e+00> : vector<16x128xf32>
    %114 = tpu.matmul %112, %113, %cst_36 {dimension_numbers = #tpu.dot_dimension_numbers<[1], [0], [0], [1], [0, 0, 1, 1], [], []>} : vector<16x32xbf16>, vector<32x128xbf16>, vector<16x128xf32> -> vector<16x128xf32>
    %c0_37 = arith.constant 0 : index
    %c0_38 = arith.constant 0 : index
    %115 = vector.load %arg11[%c0_37, %c0_38] : memref<1x128xf32, #tpu.memory_space<vmem>>, vector<1x128xf32>
    %116 = vector.broadcast %115 : vector<1x128xf32> to vector<16x128xf32>
    %117 = arith.addf %114, %116 : vector<16x128xf32>
    %118 = arith.mulf %117, %117 : vector<16x128xf32>
    %119 = arith.mulf %117, %118 : vector<16x128xf32>
    %cst_39 = arith.constant 4.471500e-02 : f32
    %120 = vector.broadcast %cst_39 : f32 to vector<16x128xf32>
    %121 = arith.mulf %120, %119 : vector<16x128xf32>
    %122 = arith.addf %117, %121 : vector<16x128xf32>
    %cst_40 = arith.constant 0.797884583 : f32
    %123 = vector.broadcast %cst_40 : f32 to vector<16x128xf32>
    %124 = arith.mulf %123, %122 : vector<16x128xf32>
    %125 = math.tanh %124 : vector<16x128xf32>
    %cst_41 = arith.constant 1.000000e+00 : f32
    %126 = vector.broadcast %cst_41 : f32 to vector<16x128xf32>
    %127 = arith.addf %126, %125 : vector<16x128xf32>
    %cst_42 = arith.constant 5.000000e-01 : f32
    %128 = vector.broadcast %cst_42 : f32 to vector<16x128xf32>
    %129 = arith.mulf %128, %127 : vector<16x128xf32>
    %130 = arith.mulf %117, %129 : vector<16x128xf32>
    %131 = arith.truncf %130 : vector<16x128xf32> to vector<16x128xbf16>
    %c0_43 = arith.constant 0 : index
    %c0_44 = arith.constant 0 : index
    %132 = vector.load %arg12[%c0_43, %c0_44] : memref<128x32xbf16, #tpu.memory_space<vmem>>, vector<128x32xbf16>
    %cst_45 = arith.constant dense<0.000000e+00> : vector<16x32xf32>
    %133 = tpu.matmul %131, %132, %cst_45 {dimension_numbers = #tpu.dot_dimension_numbers<[1], [0], [0], [1], [0, 0, 1, 1], [], []>} : vector<16x128xbf16>, vector<128x32xbf16>, vector<16x32xf32> -> vector<16x32xf32>
    %c0_46 = arith.constant 0 : index
    %c0_47 = arith.constant 0 : index
    %134 = vector.load %arg13[%c0_46, %c0_47] : memref<1x32xf32, #tpu.memory_space<vmem>>, vector<1x32xf32>
    %135 = vector.broadcast %134 : vector<1x32xf32> to vector<16x32xf32>
    %136 = arith.addf %133, %135 : vector<16x32xf32>
    %137 = arith.addf %89, %136 : vector<16x32xf32>
    %c0_48 = arith.constant 0 : index
    %c0_49 = arith.constant 0 : index
    %138 = vector.load %arg14[%c0_48, %c0_49] : memref<16x32xf32, #tpu.memory_space<vmem>>, vector<16x32xf32>
    tpu.vector_store %arg14[%c0_48, %c0_49], %137 {strides = array<i32>} : memref<16x32xf32, #tpu.memory_space<vmem>>, vector<16x32xf32>,
    return
  }
}

</mosaic_0001>

<bundles_post_ra>
// kernel: gpt_block.1
= control target key start
LH: loop header
LB: loop body
LE: loop exit
PB: predicated region body
PF: predicated region fallthrough
CT: control target
= control target key end

     0   :  { %vm53_vm0 = vcmask 261120   ;;  %s1595_s0 = inlined_call_operand.vmem [shape: f32[16,32], index: 0, kind: input, shape index: {}]   ;;  %s1596_s1 = inlined_call_operand.vmem [shape: f32[16,16], index: 1, kind: input, shape index: {}]   ;;  %s1597_s2 = inlined_call_operand.vmem [shape: f32[1,32], index: 2, kind: input, shape index: {}]   ;;  %s1598_s3 = inlined_call_operand.vmem [shape: f32[1,32], index: 3, kind: input, shape index: {}]   ;;  %s1599_s4 = inlined_call_operand.vmem [shape: bf16[32,96], index: 4, kind: input, shape index: {}]   ;;  %s1600_s5 = inlined_call_operand.vmem [shape: f32[1,96], index: 5, kind: input, shape index: {}]   ;;  %s1601_s6 = inlined_call_operand.vmem [shape: bf16[32,32], index: 6, kind: input, shape index: {}]   ;;  %s1602_s7 = inlined_call_operand.vmem [shape: f32[1,32], index: 7, kind: input, shape index: {}]   ;;  %s1603_s8 = inlined_call_operand.vmem [shape: f32[1,32], index: 8, kind: input, shape index: {}]   ;;  %s1604_s9 = inlined_call_operand.vmem [shape: f32[1,32], index: 9, kind: input, shape index: {}]   ;;  %s1605_s10 = inlined_call_operand.vmem [shape: bf16[32,128], index: 10, kind: input, shape index: {}]   ;;  %s1606_s11 = inlined_call_operand.vmem [shape: f32[1,128], index: 11, kind: input, shape index: {}]   ;;  %s1607_s12 = inlined_call_operand.vmem [shape: bf16[128,32], index: 12, kind: input, shape index: {}]   ;;  %s1608_s13 = inlined_call_operand.vmem [shape: f32[1,32], index: 13, kind: input, shape index: {}]   ;;  %s1609_s14 = inlined_call_operand.hbm [shape: f32[16,32], index: 14, kind: output, shape index: {}]  }
   0x1   :  { %v1375_v0 = vld [vmem:[%s1595_s0] sm:$0xff]  ;;  %v1380_v1 = vld [vmem:[%s1595_s0 + $0x8] sm:$0xff] }
   0x2   :  { %v54_v2 = vsel %vm53_vm0, %v1375_v0, 0.0  ;;  %v57_v3 = vsel %vm53_vm0, %v1380_v1, 0.0 }
   0x3   :  { %55 = vadd.xlane.f32.xlu0 %v54_v2 }
   0x7   :  { %58 = vadd.xlane.f32.xlu0 %v57_v3 }
   0x8   :  { %19 = vsyncpa [#allocation3], 0  ;;  %v1205_v14 = vld [vmem:[%s1599_s4 + $0x8] sm:$0xff]   ;;  %v1285_v15 = vmov 0.0   ;;  %vm1286_vm1 = vmmov 0   ;;  %v1206_v16 = vld [vmem:[%s1599_s4] sm:$0xff]  }
   0x9   :  { %1086 = vmatprep.subr.bf16.mxu0 %v1285_v15  ;;  %1090 = vmatprep.mubr.msk.bf16.mxu0 %vm1286_vm1, %v1285_v15  ;;  %v1019_v25 = vld [vmem:[%s1597_s2] ss:$0 sm:$0xff]  ;;  %s1287_s2 = smov 112   ;;  %s1289_s25 = smov 104   ;;  %vm177_vm2 = vcmask 64512   ;;  %vm372_vm3 = vcmask 130048  }
   0xa   :  { %1087 = vmatpush3.bf16.msra.mxu0 %v1205_v14  ;;  %1106 = vmatprep.subr.bf16.mxu1 %v1285_v15  ;;  %v1020_v29 = vld [vmem:[%s1598_s3] ss:$0 sm:$0xff]  ;;  %s1288_s3 = smov 120   ;;  %s1290_s26 = smov 96   ;;  %v174_v58 = vld [vmem:[%s1596_s1 + $0x8] sm:$0xff]  ;;  %vm681_vm4 = vcmask 195584  }
   0xb   :  { %1088 = vmatprep.subr.bf16.mxu0 %v1285_v15  ;;  %1108 = vmatprep.mubr.msk.bf16.mxu1 %vm1286_vm1, %v1285_v15  ;;  %v1021_v35 = vld [vmem:[%s1600_s5] ss:$0 sm:$0xff]  ;;  %s1291_s5 = smov 64   ;;  %s1292_s17 = smov 8  }
   0xc   :  { %v173_v54 = vld [vmem:[%s1596_s1] sm:$0xff]  ;;  %s1294_s18 = smov 24  }
   0xe   :  { %1089 = vmatpush3.bf16.msra.mxu0 %v1206_v16 }
   0xf   :  { %1094 = vmatprep.subr.bf16.mxu0 %v1285_v15 }
  0x8c   :  { %v56_v4 = vpop.xlane.xlu0 %55 }
  0x8d   :  { %v61_v5 = vmul.f32 0.03125, %v56_v4 }
  0x8f   :  { %v63_v6 = vsub.f32 %v1375_v0, %v61_v5 }
  0x90   :  { %v59_v7 = vpop.xlane.xlu0 %58 }
  0x91   :  { %v62_v8 = vmul.f32 0.03125, %v59_v7  ;;  %v65_v9 = vmul.f32 %v63_v6, %v63_v6 }
  0x93   :  { %v64_v10 = vsub.f32 %v1380_v1, %v62_v8  ;;  %v67_v11 = vsel %vm53_vm0, %v65_v9, 0.0 }
  0x94   :  { %68 = vadd.xlane.f32.xlu1 %v67_v11 }
  0x95   :  { %v66_v12 = vmul.f32 %v64_v10, %v64_v10 }
  0x97   :  { %v70_v13 = vsel %vm53_vm0, %v66_v12, 0.0 }
  0x98   :  { %71 = vadd.xlane.f32.xlu1 %v70_v13 }
 0x11d   :  { %v69_v17 = vpop.xlane.xlu1 %68 }
 0x11e   :  { %v73_v18 = vmul.f32 0.03125, %v69_v17 }
 0x120   :  { %v75_v19 = vadd.f32 1e-05, %v73_v18 }
 0x121   :  { %v72_v20 = vpop.xlane.xlu1 %71 }
 0x122   :  { %1219 = vrsqrt.f32 %v75_v19  ;;  %v74_v21 = vmul.f32 0.03125, %v72_v20 }
 0x124   :  { %v76_v22 = vadd.f32 1e-05, %v74_v21 }
 0x126   :  { %1221 = vrsqrt.f32 %v76_v22 }
 0x12f   :  { %v1220_v23 = vpop.eup %1219 }
 0x130   :  { %v79_v24 = vmul.f32 %v1220_v23, %v63_v6 }
 0x132   :  { %v87_v28 = vmul.f32 %v1019_v25, %v79_v24 }
 0x133   :  { %v1222_v26 = vpop.eup %1221 }
 0x134   :  { %v80_v27 = vmul.f32 %v1222_v26, %v64_v10  ;;  %v95_v31 = vadd.f32 %v1020_v29, %v87_v28 }
 0x136   :  { %v88_v30 = vmul.f32 %v1019_v25, %v80_v27 }
 0x138   :  { %v96_v32 = vadd.f32 %v1020_v29, %v88_v30 }
 0x13a   :  { %v97_v33 = vpack.c.bf16 %v96_v32, %v95_v31 }
 0x13c   :  { %1091 = vmatmul.mubr.msk.bf16.vlgmr.msra.gmra.mxu0 %vm53_vm0, %v97_v33 }
 0x13d   :  { %1096 = vmatprep.mubr.msk.bf16.mxu0 %vm1286_vm1, %v1285_v15 }
 0x1fc   :  { %v158_v34 = vpop.f32.mrf.mxu0 }
 0x1fd   :  { %v159_v38 = vadd.f32 %v1021_v35, %v158_v34 }
 0x1fe   :  { %v1092_v36 = vpop.f32.mrf.mxu0 }
 0x200   :  { %v161_v37 = vpop.f32.mrf.mxu0 }
 0x201   :  { %v162_v39 = vadd.f32 %v1021_v35, %v161_v37 }
 0x202   :  { %v1093_v40 = vpop.f32.mrf.mxu0 }
 0x203   :  { %v165_v41 = vpack.c.bf16 %v162_v39, %v159_v38 }
 0x205   :  { %169 = vrot.lane.b32.xlu1 %v165_v41, %s1287_s2  ;;  %167 = vrot.lane.b32.xlu0 %v165_v41, %s1288_s3 }
 0x209   :  { %171 = vrot.lane.b32.xlu1 %v165_v41, %s1289_s25 }
 0x20d   :  { %175 = vrot.lane.b32.xlu1 %v165_v41, %s1290_s26 }
 0x277   :  { %v1416_v42 = vpop.permute.xlu1 %169  ;;  %v1418_v43 = vpop.permute.xlu0 %167 }
 0x278   :  { %274 = vrot.lane.b32.xlu1 %v1416_v42, %s1290_s26  ;;  %225 = vrot.lane.b32.xlu0 %v1418_v43, %s1290_s26 }
 0x27b   :  { %v1422_v44 = vpop.permute.xlu1 %171 }
 0x27c   :  { %449 = vrot.lane.b32.xlu1 %v165_v41, %s1291_s5  ;;  %323 = vrot.lane.b32.xlu0 %v1422_v44, %s1290_s26 }
 0x27f   :  { %v176_v45 = vpop.permute.xlu1 %175 }
 0x280   :  { %v182_v46 = vsel %vm177_vm2, %v176_v45, 0 }
 0x281   :  { %1095 = vmatpush3.bf16.xpose.msra.mxu0 %v182_v46 }
 0x282   :  { %1100 = vmatprep.subr.bf16.mxu0 %v1285_v15 }
 0x288   :  { %1097 = vmatmul.mubr.msk.bf16.vlgmr.msra.gmra.mxu0 %vm177_vm2, %v165_v41 }
 0x289   :  { %1102 = vmatprep.mubr.msk.bf16.mxu0 %vm1286_vm1, %v1285_v15 }
 0x2ea   :  { %v275_v47 = vpop.permute.xlu1 %274  ;;  %v226_v48 = vpop.permute.xlu0 %225 }
 0x2eb   :  { %v231_v49 = vsel %vm177_vm2, %v226_v48, 0  ;;  %v280_v50 = vsel %vm177_vm2, %v275_v47, 0 }
 0x2ec   :  { %1101 = vmatpush3.bf16.xpose.msra.mxu0 %v231_v49  ;;  %1107 = vmatpush3.bf16.xpose.msra.mxu1 %v280_v50 }
 0x2ed   :  { %1112 = vmatprep.subr.bf16.mxu0 %v1285_v15  ;;  %1118 = vmatprep.subr.bf16.mxu1 %v1285_v15 }
 0x2ee   :  { %v324_v51 = vpop.permute.xlu0 %323  ;;  %v450_v52 = vpop.permute.xlu1 %449 }
 0x2ef   :  { %v329_v53 = vsel %vm177_vm2, %v324_v51, 0 }
 0x2f3   :  { %1103 = vmatmul.mubr.msk.bf16.vlgmr.msra.gmra.mxu0 %vm177_vm2, %v1418_v43  ;;  %1109 = vmatmul.mubr.msk.bf16.vlgmr.msra.gmra.mxu1 %vm177_vm2, %v1416_v42 }
 0x2f4   :  { %1113 = vmatpush3.bf16.xpose.msra.mxu0 %v329_v53  ;;  %1119 = vmatpush3.bf16.msra.mxu1 %v450_v52 }
 0x2f5   :  { %1114 = vmatprep.mubr.msk.bf16.mxu0 %vm1286_vm1, %v1285_v15  ;;  %1120 = vmatprep.mubr.msk.bf16.mxu1 %vm1286_vm1, %v1285_v15 }
 0x2f6   :  { %1130 = vmatprep.subr.bf16.mxu1 %v1285_v15  ;;  %1124 = vmatprep.subr.bf16.mxu0 %v1285_v15 }
 0x2fb   :  { %1115 = vmatmul.mubr.msk.bf16.vlgmr.msra.gmra.mxu0 %vm177_vm2, %v1422_v44 }
 0x2fc   :  { %1126 = vmatprep.mubr.msk.bf16.mxu0 %vm1286_vm1, %v1285_v15 }
 0x348   :  { %v218_v55 = vpop.f32.mrf.mxu0 }
 0x349   :  { %v219_v56 = vadd.f32 %v218_v55, %v173_v54 }
 0x34a   :  { %v1098_v57 = vpop.f32.mrf.mxu0 }
 0x34b   :  { %v373_v59 = vsel %vm372_vm3, %v219_v56, -inf }
 0x34c   :  { %374 = vmax.xlane.f32.xlu1 %v373_v59  ;;  %v221_v60 = vpop.f32.mrf.mxu0 }
 0x34d   :  { %v222_v61 = vadd.f32 %v221_v60, %v174_v58 }
 0x34e   :  { %v1099_v62 = vpop.f32.mrf.mxu0 }
 0x34f   :  { %v376_v63 = vsel %vm372_vm3, %v222_v61, -inf }
 0x350   :  { %377 = vmax.xlane.f32.xlu0 %v376_v63 }
 0x3b3   :  { %v267_v2 = vpop.f32.mrf.mxu0  ;;  %v316_v3 = vpop.f32.mrf.mxu1 }
 0x3b4   :  { %v268_v4 = vadd.f32 %v267_v2, %v173_v54  ;;  %v317_v5 = vadd.f32 %v316_v3, %v173_v54 }
 0x3b5   :  { %v1104_v6 = vpop.f32.mrf.mxu0  ;;  %v1110_v7 = vpop.f32.mrf.mxu1 }
 0x3b6   :  { %v385_v8 = vsel %vm372_vm3, %v317_v5, -inf  ;;  %v379_v9 = vsel %vm372_vm3, %v268_v4, -inf }
 0x3b7   :  { %v319_v10 = vpop.f32.mrf.mxu1  ;;  %386 = vmax.xlane.f32.xlu1 %v385_v8  ;;  %380 = vmax.xlane.f32.xlu0 %v379_v9  ;;  %v270_v11 = vpop.f32.mrf.mxu0 }
 0x3b8   :  { %v271_v12 = vadd.f32 %v270_v11, %v174_v58  ;;  %v320_v16 = vadd.f32 %v319_v10, %v174_v58 }
 0x3b9   :  { %v1105_v13 = vpop.f32.mrf.mxu0  ;;  %v1111_v14 = vpop.f32.mrf.mxu1 }
 0x3ba   :  { %v382_v17 = vsel %vm372_vm3, %v271_v12, -inf  ;;  %v388_v21 = vsel %vm372_vm3, %v320_v16, -inf }
 0x3bb   :  { %383 = vmax.xlane.f32.xlu0 %v382_v17  ;;  %v365_v18 = vpop.f32.mrf.mxu0 }
 0x3bc   :  { %v366_v19 = vadd.f32 %v365_v18, %v173_v54 }
 0x3bd   :  { %v1116_v20 = vpop.f32.mrf.mxu0 }
 0x3be   :  { %v391_v22 = vsel %vm372_vm3, %v366_v19, -inf }
 0x3bf   :  { %389 = vmax.xlane.f32.xlu0 %v388_v21  ;;  %392 = vmax.xlane.f32.xlu1 %v391_v22  ;;  %v368_v23 = vpop.f32.mrf.mxu0 }
 0x3c0   :  { %v369_v24 = vadd.f32 %v368_v23, %v174_v58 }
 0x3c1   :  { %v1117_v25 = vpop.f32.mrf.mxu0 }
 0x3c2   :  { %v394_v26 = vsel %vm372_vm3, %v369_v24, -inf }
 0x3c3   :  { %395 = vmax.xlane.f32.xlu0 %v394_v26 }
 0x3d0   :  { %543 = vrot.lane.b32.xlu1 %v1416_v42, %s1291_s5 }
 0x3d4   :  { %590 = vrot.lane.b32.xlu1 %v1422_v44, %s1291_s5 }
 0x3d5   :  { %v375_v27 = vpop.xlane.xlu1 %374 }
 0x3d6   :  { %v397_v28 = vsub.f32 %v219_v56, %v375_v27 }
 0x3d8   :  { %v405_v29 = vmul.f32 1.442695, %v397_v28 }
 0x3d9   :  { %v378_v30 = vpop.xlane.xlu0 %377  ;;  %496 = vrot.lane.b32.xlu0 %v1418_v43, %s1291_s5 }
 0x3da   :  { %v398_v31 = vsub.f32 %v222_v61, %v378_v30  ;;  %1223 = vpow2.f32 %v405_v29 }
 0x3dc   :  { %v407_v32 = vmul.f32 1.442695, %v398_v31 }
 0x3de   :  { %1225 = vpow2.f32 %v407_v32  ;;  %v1208_v32 = vld [vmem:[%s1601_s6] sm:$0xff]  }
 0x3e7   :  { %v1224_v33 = vpop.eup %1223 }
 0x3e8   :  { %v421_v10 = vsel %vm372_vm3, %v1224_v33, 0.0 }
 0x3eb   :  { %v1470_v34 = vpop.eup %1225 }
 0x3ec   :  { %v445_v35 = vpack.c.bf16 %v1470_v34, %v1224_v33  ;;  %v424_v11 = vsel %vm372_vm3, %v1470_v34, 0.0 }
 0x3ee   :  { %1121 = vmatmul.mubr.msk.bf16.vlgmr.msra.gmra.mxu1 %vm372_vm3, %v445_v35 }
 0x3ef   :  { %1132 = vmatprep.mubr.msk.bf16.mxu1 %vm1286_vm1, %v1285_v15 }
 0x440   :  { %v387_v36 = vpop.xlane.xlu1 %386  ;;  %v381_v37 = vpop.xlane.xlu0 %380 }
 0x441   :  { %v401_v38 = vsub.f32 %v317_v5, %v387_v36  ;;  %v399_v39 = vsub.f32 %v268_v4, %v381_v37 }
 0x443   :  { %v413_v40 = vmul.f32 1.442695, %v401_v38  ;;  %v409_v41 = vmul.f32 1.442695, %v399_v39 }
 0x444   :  { %v384_v42 = vpop.xlane.xlu0 %383 }
 0x445   :  { %1227 = vpow2.f32 %v413_v40  ;;  %v400_v43 = vsub.f32 %v271_v12, %v384_v42 }
 0x446   :  { %1229 = vpow2.f32 %v409_v41 }
 0x447   :  { %v411_v44 = vmul.f32 1.442695, %v400_v43 }
 0x448   :  { %v390_v45 = vpop.xlane.xlu0 %389  ;;  %v393_v46 = vpop.xlane.xlu1 %392 }
 0x449   :  { %1231 = vpow2.f32 %v411_v44  ;;  %v402_v47 = vsub.f32 %v320_v16, %v390_v45  ;;  %v403_v48 = vsub.f32 %v366_v19, %v393_v46 }
 0x44b   :  { %v415_v49 = vmul.f32 1.442695, %v402_v47  ;;  %v417_v50 = vmul.f32 1.442695, %v403_v48 }
 0x44c   :  { %v544_v51 = vpop.permute.xlu1 %543  ;;  %v396_v52 = vpop.xlane.xlu0 %395 }
 0x44d   :  { %1233 = vpow2.f32 %v415_v49  ;;  %v404_v53 = vsub.f32 %v369_v24, %v396_v52  ;;  %1131 = vmatpush3.bf16.msra.mxu1 %v544_v51  ;;  %v1207_v24 = vld [vmem:[%s1601_s6 + $0x8] sm:$0xff]   ;;  %s1293_s6 = smov 16  }
 0x44e   :  { %1235 = vpow2.f32 %v417_v50  ;;  %1142 = vmatprep.subr.bf16.mxu1 %v1285_v15 }
 0x44f   :  { %v419_v54 = vmul.f32 1.442695, %v404_v53 }
 0x450   :  { %v497_v55 = vpop.permute.xlu0 %496  ;;  %v591_v63 = vpop.permute.xlu1 %590 }
 0x451   :  { %1237 = vpow2.f32 %v419_v54  ;;  %1125 = vmatpush3.bf16.msra.mxu0 %v497_v55 }
 0x452   :  { %v1228_v56 = vpop.eup %1227  ;;  %1136 = vmatprep.subr.bf16.mxu0 %v1285_v15 }
 0x453   :  { %v1230_v57 = vpop.eup %1229  ;;  %v433_v58 = vsel %vm372_vm3, %v1228_v56, 0.0 }
 0x454   :  { %v427_v59 = vsel %vm372_vm3, %v1230_v57, 0.0  ;;  %434 = vadd.xlane.f32.xlu0 %v433_v58 }
 0x455   :  { %428 = vadd.xlane.f32.xlu1 %v427_v59 }
 0x456   :  { %v1232_v60 = vpop.eup %1231 }
 0x457   :  { %v430_v61 = vsel %vm372_vm3, %v1232_v60, 0.0  ;;  %v446_v62 = vpack.c.bf16 %v1232_v60, %v1230_v57 }
 0x458   :  { %431 = vadd.xlane.f32.xlu0 %v430_v61 }
 0x459   :  { %1127 = vmatmul.mubr.msk.bf16.vlgmr.msra.gmra.mxu0 %vm372_vm3, %v446_v62 }
 0x45a   :  { %v1234_v2 = vpop.eup %1233  ;;  %1137 = vmatpush3.bf16.msra.mxu0 %v591_v63  ;;  %1138 = vmatprep.mubr.msk.bf16.mxu0 %vm1286_vm1, %v1285_v15 }
 0x45b   :  { %v1236_v3 = vpop.eup %1235  ;;  %v436_v4 = vsel %vm372_vm3, %v1234_v2, 0.0  ;;  %v447_v5 = vpack.c.bf16 %v1234_v2, %v1228_v56  ;;  %1150 = vmatprep.subr.bf16.mxu0 %v1285_v15 }
 0x45c   :  { %v439_v6 = vsel %vm372_vm3, %v1236_v3, 0.0  ;;  %437 = vadd.xlane.f32.xlu0 %v436_v4 }
 0x45d   :  { %440 = vadd.xlane.f32.xlu1 %v439_v6  ;;  %1133 = vmatmul.mubr.msk.bf16.vlgmr.msra.gmra.mxu1 %vm372_vm3, %v447_v5 }
 0x45e   :  { %v1238_v7 = vpop.eup %1237  ;;  %1146 = vmatprep.mubr.msk.bf16.mxu1 %vm1286_vm1, %v1285_v15  ;;  %1143 = vmatpush3.bf16.msra.mxu1 %v1207_v24 }
 0x45f   :  { %v442_v8 = vsel %vm372_vm3, %v1238_v7, 0.0  ;;  %v448_v9 = vpack.c.bf16 %v1238_v7, %v1236_v3  ;;  %1144 = vmatprep.subr.bf16.mxu1 %v1285_v15 }
 0x460   :  { %443 = vadd.xlane.f32.xlu0 %v442_v8 }
 0x461   :  { %422 = vadd.xlane.f32.xlu1 %v421_v10  ;;  %1139 = vmatmul.mubr.msk.bf16.vlgmr.msra.gmra.mxu0 %vm372_vm3, %v448_v9 }
 0x462   :  { %1154 = vmatprep.mubr.msk.bf16.mxu0 %vm1286_vm1, %v1285_v15  ;;  %1145 = vmatpush3.bf16.msra.mxu1 %v1208_v32  ;;  %v1209_v32 = vld [vmem:[%s1605_s10 + $0x8] sm:$0xff]  }
 0x463   :  { %1158 = vmatprep.subr.bf16.mxu1 %v1285_v15  ;;  %1151 = vmatpush3.bf16.msra.mxu0 %v1209_v32 }
 0x464   :  { %425 = vadd.xlane.f32.xlu0 %v424_v11  ;;  %1152 = vmatprep.subr.bf16.mxu0 %v1285_v15 }
 0x4ae   :  { %v1497_v12 = vpop.f32.mrf.mxu1 }
 0x4b0   :  { %v1122_v13 = vpop.f32.mrf.mxu1 }
 0x4b1   :  { %v1036_v13 = vld [vmem:[%s1602_s7] ss:$0 sm:$0xff]  ;;  %s1295_s7 = smov [#allocation2]  }
 0x4b2   :  { %v1499_v14 = vpop.f32.mrf.mxu1  ;;  %s1008_s20 = sshll.u32 %s1295_s7, 4  ;;  %s1009_s20 = int_to_ptr.vmem [resolvable:$true] %s1008_s20 }
 0x4b3   :  { %s1263_s21 = scalar_lea.vmem %s1009_s20, 256  ;;  %p1268_p1 = scmp.lt.s32.totalorder %s1009_s20, %s1009_s20 }
 0x4b4   :  { %v1123_v16 = vpop.f32.mrf.mxu1  ;;  %p1264_p0 = scmp.ne.s32.totalorder %s1009_s20, %s1263_s21  ;;  %p1269_p2 = scmp.lt.s32.totalorder %s1263_s21, %s1263_s21 }
 0x4b6   :  { %p1270_p3 = por %p1269_p2, %p1268_p1 }
 0x4b8   :  { %p1271_p4 = pnand %p1270_p3, %p1264_p0 }
 0x4dd   :  { %v435_v17 = vpop.xlane.xlu0 %434 }
 0x4de   :  { %v429_v19 = vpop.xlane.xlu1 %428 }
 0x4df   :  { %1239 = vrcp.f32 %v429_v19 }
 0x4e1   :  { %v432_v18 = vpop.xlane.xlu0 %431 }
 0x4e2   :  { %1241 = vrcp.f32 %v432_v18 }
 0x4e3   :  { %1243 = vrcp.f32 %v435_v17 }
 0x4e5   :  { %v438_v20 = vpop.xlane.xlu0 %437 }
 0x4e6   :  { %v441_v21 = vpop.xlane.xlu1 %440  ;;  %1245 = vrcp.f32 %v438_v20 }
 0x4e7   :  { %1247 = vrcp.f32 %v441_v21 }
 0x4e9   :  { %v444_v22 = vpop.xlane.xlu0 %443 }
 0x4ea   :  { %1249 = vrcp.f32 %v444_v22  ;;  %v423_v52 = vpop.xlane.xlu1 %422 }
 0x4eb   :  { %1251 = vrcp.f32 %v423_v52  ;;  %v1212_v52 = vld [vmem:[%s1607_s12 + $0x30] sm:$0xff]  }
 0x4ec   :  { %v1240_v26 = vpop.eup %1239 }
 0x4ed   :  { %v426_v53 = vpop.xlane.xlu0 %425 }
 0x4ee   :  { %1253 = vrcp.f32 %v426_v53  ;;  %v1213_v53 = vld [vmem:[%s1607_s12 + $0x28] sm:$0xff]  }
 0x4ef   :  { %v1242_v27 = vpop.eup %1241 }
 0x4f0   :  { %v1244_v35 = vpop.eup %1243 }
 0x4f3   :  { %v1246_v37 = vpop.eup %1245 }
 0x4f4   :  { %v1248_v44 = vpop.eup %1247 }
 0x4f7   :  { %v1250_v46 = vpop.eup %1249 }
 0x4f8   :  { %v1252_v55 = vpop.eup %1251 }
 0x4f9   :  { %v645_v62 = vmul.f32 %v1252_v55, %v1497_v12  ;;  %v1215_v55 = vld [vmem:[%s1607_s12 + $0x18] sm:$0xff]  }
 0x4fb   :  { %v1254_v56 = vpop.eup %1253 }
 0x4fc   :  { %v646_v63 = vmul.f32 %v1254_v56, %v1499_v14  ;;  %v1216_v56 = vld [vmem:[%s1607_s12 + $0x10] sm:$0xff]  }
 0x519   :  { %v536_v23 = vpop.f32.mrf.mxu0 }
 0x51a   :  { %v647_v30 = vmul.f32 %v1240_v26, %v536_v23 }
 0x51b   :  { %v1128_v25 = vpop.f32.mrf.mxu0 }
 0x51d   :  { %v539_v28 = vpop.f32.mrf.mxu0  ;;  %v583_v29 = vpop.f32.mrf.mxu1 }
 0x51e   :  { %v648_v31 = vmul.f32 %v1242_v27, %v539_v28  ;;  %v649_v40 = vmul.f32 %v1244_v35, %v583_v29 }
 0x51f   :  { %v1129_v33 = vpop.f32.mrf.mxu0  ;;  %v1134_v34 = vpop.f32.mrf.mxu1 }
 0x520   :  { %v1190_v36 = vpack.i.bf16 %v648_v31, %v647_v30  ;;  %v1210_v33 = vld [vmem:[%s1605_s10] sm:$0xff]  }
 0x521   :  { %v586_v38 = vpop.f32.mrf.mxu1  ;;  %v630_v39 = vpop.f32.mrf.mxu0  ;;  %1153 = vmatpush3.bf16.msra.mxu0 %v1210_v33 }
 0x522   :  { %v650_v41 = vmul.f32 %v1246_v37, %v586_v38  ;;  %1191 = vrot.lane.b32.xlu1 %v1190_v36, %s1292_s17  ;;  %v651_v48 = vmul.f32 %v1248_v44, %v630_v39 }
 0x523   :  { %v1135_v42 = vpop.f32.mrf.mxu1  ;;  %v1140_v43 = vpop.f32.mrf.mxu0 }
 0x524   :  { %v1195_v45 = vpack.i.bf16 %v650_v41, %v649_v40  ;;  %v1037_v42 = vld [vmem:[%s1603_s8] ss:$0 sm:$0xff] }
 0x525   :  { %v633_v47 = vpop.f32.mrf.mxu0 }
 0x526   :  { %v652_v49 = vmul.f32 %v1250_v46, %v633_v47  ;;  %1196 = vrot.lane.b32.xlu0 %v1195_v45, %s1293_s6  ;;  %v1038_v46 = vld [vmem:[%s1604_s9] ss:$0 sm:$0xff] }
 0x527   :  { %v1141_v50 = vpop.f32.mrf.mxu0 }
 0x528   :  { %v1200_v51 = vpack.i.bf16 %v652_v49, %v651_v48 }
 0x52a   :  { %1201 = vrot.lane.b32.xlu1 %v1200_v51, %s1294_s18  ;;  %v1211_v51 = vld [vmem:[%s1607_s12 + $0x38] sm:$0xff]  }
 0x594   :  { %v1192_v54 = vpop.permute.xlu1 %1191 }
 0x595   :  { %v1194_v58 = vunpack.i.h.bf16 %v1192_v54  ;;  %v1193_v59 = vunpack.i.l.bf16 %v1192_v54  ;;  %v1214_v54 = vld [vmem:[%s1607_s12 + $0x20] sm:$0xff]  }
 0x597   :  { %v678_v3 = vsel %vm177_vm2, %v646_v63, %v1194_v58  ;;  %v677_v4 = vsel %vm177_vm2, %v645_v62, %v1193_v59  ;;  %v1218_v58 = vld [vmem:[%s1607_s12] sm:$0xff]  }
 0x598   :  { %v1197_v57 = vpop.permute.xlu0 %1196  ;;  %v1039_v59 = vld [vmem:[%s1606_s11] ss:$0 sm:$0xff] }
 0x599   :  { %v1199_v60 = vunpack.i.h.bf16 %v1197_v57  ;;  %v1198_v61 = vunpack.i.l.bf16 %v1197_v57  ;;  %v1217_v57 = vld [vmem:[%s1607_s12 + $0x8] sm:$0xff]  }
 0x59b   :  { %v679_v7 = vsel %vm372_vm3, %v677_v4, %v1198_v61  ;;  %v680_v8 = vsel %vm372_vm3, %v678_v3, %v1199_v60 }
 0x59c   :  { %v1202_v2 = vpop.permute.xlu1 %1201 }
 0x59d   :  { %v1204_v5 = vunpack.i.h.bf16 %v1202_v2  ;;  %v1203_v6 = vunpack.i.l.bf16 %v1202_v2 }
 0x59f   :  { %v683_v9 = vsel %vm681_vm4, %v680_v8, %v1204_v5  ;;  %v682_v10 = vsel %vm681_vm4, %v679_v7, %v1203_v6 }
 0x5a0   :  { %v684_v11 = vpack.c.bf16 %v683_v9, %v682_v10 }
 0x5a2   :  { %1147 = vmatmul.mubr.msk.bf16.vlgmr.msra.gmra.mxu1 %vm53_vm0, %v684_v11 }
 0x5a3   :  { %1174 = vmatprep.mubr.msk.bf16.mxu1 %vm1286_vm1, %v1285_v15  ;;  %1159 = vmatpush3.bf16.msra.mxu1 %v1211_v51 }
 0x5a4   :  { %1160 = vmatprep.subr.bf16.mxu1 %v1285_v15 }
 0x5a7   :  { %1161 = vmatpush3.bf16.msra.mxu1 %v1212_v52 }
 0x5a8   :  { %1162 = vmatprep.subr.bf16.mxu1 %v1285_v15 }
 0x5ab   :  { %1163 = vmatpush3.bf16.msra.mxu1 %v1213_v53 }
 0x5ac   :  { %1164 = vmatprep.subr.bf16.mxu1 %v1285_v15 }
 0x5af   :  { %1165 = vmatpush3.bf16.msra.mxu1 %v1214_v54 }
 0x5b0   :  { %1166 = vmatprep.subr.bf16.mxu1 %v1285_v15 }
 0x5b3   :  { %1167 = vmatpush3.bf16.msra.mxu1 %v1215_v55 }
 0x5b4   :  { %1168 = vmatprep.subr.bf16.mxu1 %v1285_v15 }
 0x5b7   :  { %1169 = vmatpush3.bf16.msra.mxu1 %v1216_v56 }
 0x5b8   :  { %1170 = vmatprep.subr.bf16.mxu1 %v1285_v15 }
 0x5bb   :  { %1171 = vmatpush3.bf16.msra.mxu1 %v1217_v57 }
 0x5bc   :  { %1172 = vmatprep.subr.bf16.mxu1 %v1285_v15 }
 0x5bf   :  { %1173 = vmatpush3.bf16.msra.mxu1 %v1218_v58 }
 0x662   :  { %v738_v12 = vpop.f32.mrf.mxu1 }
 0x663   :  { %v745_v14 = vadd.f32 %v738_v12, %v1375_v0 }
 0x664   :  { %v1148_v16 = vpop.f32.mrf.mxu1 }
 0x665   :  { %v1523_v17 = vadd.f32 %v1036_v13, %v745_v14 }
 0x666   :  { %v741_v18 = vpop.f32.mrf.mxu1 }
 0x667   :  { %v746_v19 = vadd.f32 %v741_v18, %v1380_v1  ;;  %v758_v20 = vsel %vm53_vm0, %v1523_v17, 0.0 }
 0x668   :  { %759 = vadd.xlane.f32.xlu1 %v758_v20  ;;  %v1149_v21 = vpop.f32.mrf.mxu1 }
 0x669   :  { %v1528_v22 = vadd.f32 %v1036_v13, %v746_v19 }
 0x66b   :  { %v761_v23 = vsel %vm53_vm0, %v1528_v22, 0.0 }
 0x66c   :  { %762 = vadd.xlane.f32.xlu0 %v761_v23 }
 0x6f1   :  { %v760_v24 = vpop.xlane.xlu1 %759 }
 0x6f2   :  { %v764_v25 = vmul.f32 0.03125, %v760_v24 }
 0x6f4   :  { %v766_v0 = vsub.f32 %v1523_v17, %v764_v25  ;;  %v1043_v25 = vld [vmem:[%s1608_s13] ss:$0 sm:$0xff] }
 0x6f5   :  { %v763_v26 = vpop.xlane.xlu0 %762 }
 0x6f6   :  { %v765_v27 = vmul.f32 0.03125, %v763_v26  ;;  %v768_v28 = vmul.f32 %v766_v0, %v766_v0 }
 0x6f8   :  { %v767_v1 = vsub.f32 %v1528_v22, %v765_v27  ;;  %v770_v29 = vsel %vm53_vm0, %v768_v28, 0.0 }
 0x6f9   :  { %771 = vadd.xlane.f32.xlu0 %v770_v29 }
 0x6fa   :  { %v769_v30 = vmul.f32 %v767_v1, %v767_v1 }
 0x6fc   :  { %v773_v31 = vsel %vm53_vm0, %v769_v30, 0.0 }
 0x6fd   :  { %774 = vadd.xlane.f32.xlu1 %v773_v31 }
 0x782   :  { %v772_v34 = vpop.xlane.xlu0 %771 }
 0x783   :  { %v776_v35 = vmul.f32 0.03125, %v772_v34 }
 0x785   :  { %v778_v36 = vadd.f32 1e-05, %v776_v35 }
 0x786   :  { %v775_v37 = vpop.xlane.xlu1 %774 }
 0x787   :  { %1255 = vrsqrt.f32 %v778_v36  ;;  %v777_v38 = vmul.f32 0.03125, %v775_v37 }
 0x789   :  { %v779_v39 = vadd.f32 1e-05, %v777_v38 }
 0x78b   :  { %1257 = vrsqrt.f32 %v779_v39 }
 0x794   :  { %v1256_v40 = vpop.eup %1255 }
 0x795   :  { %v782_v41 = vmul.f32 %v1256_v40, %v766_v0 }
 0x797   :  { %v790_v45 = vmul.f32 %v1037_v42, %v782_v41 }
 0x798   :  { %v1258_v43 = vpop.eup %1257 }
 0x799   :  { %v783_v44 = vmul.f32 %v1258_v43, %v767_v1  ;;  %v798_v48 = vadd.f32 %v1038_v46, %v790_v45 }
 0x79b   :  { %v791_v47 = vmul.f32 %v1037_v42, %v783_v44 }
 0x79d   :  { %v799_v49 = vadd.f32 %v1038_v46, %v791_v47 }
 0x79f   :  { %v800_v50 = vpack.c.bf16 %v799_v49, %v798_v48 }
 0x7a1   :  { %1155 = vmatmul.mubr.msk.bf16.vlgmr.msra.gmra.mxu0 %vm53_vm0, %v800_v50 }
 0x861   :  { %v861_v60 = vpop.f32.mrf.mxu0 }
 0x862   :  { %v862_v61 = vadd.f32 %v1039_v59, %v861_v60 }
 0x863   :  { %v1156_v62 = vpop.f32.mrf.mxu0 }
 0x864   :  { %v868_v63 = vmul.f32 %v862_v61, %v862_v61 }
 0x865   :  { %v864_v2 = vpop.f32.mrf.mxu0 }
 0x866   :  { %v870_v3 = vmul.f32 %v868_v63, %v862_v61  ;;  %v865_v4 = vadd.f32 %v1039_v59, %v864_v2 }
 0x867   :  { %v1157_v5 = vpop.f32.mrf.mxu0 }
 0x868   :  { %v872_v6 = vmul.f32 0.044715, %v870_v3  ;;  %v869_v7 = vmul.f32 %v865_v4, %v865_v4 }
 0x86a   :  { %v874_v15 = vadd.f32 %v872_v6, %v862_v61  ;;  %v871_v8 = vmul.f32 %v869_v7, %v865_v4 }
 0x86c   :  { %v876_v9 = vmul.f32 0.7978846, %v874_v15  ;;  %v873_v10 = vmul.f32 0.044715, %v871_v8 }
 0x86e   :  { %1259 = vtanh.f32 %v876_v9  ;;  %v875_v11 = vadd.f32 %v873_v10, %v865_v4 }
 0x870   :  { %v877_v12 = vmul.f32 0.7978846, %v875_v11 }
 0x872   :  { %1261 = vtanh.f32 %v877_v12 }
 0x87b   :  { %v1260_v13 = vpop.eup %1259 }
 0x87c   :  { %v880_v14 = vadd.f32 1.0, %v1260_v13 }
 0x87e   :  { %v882_v18 = vmul.f32 0.5, %v880_v14 }
 0x87f   :  { %v1262_v16 = vpop.eup %1261 }
 0x880   :  { %v881_v19 = vadd.f32 1.0, %v1262_v16  ;;  %v884_v21 = vmul.f32 %v882_v18, %v862_v61 }
 0x882   :  { %v883_v20 = vmul.f32 0.5, %v881_v19 }
 0x884   :  { %v885_v23 = vmul.f32 %v883_v20, %v865_v4 }
 0x886   :  { %v886_v24 = vpack.c.bf16 %v885_v23, %v884_v21 }
 0x888   :  { %1175 = vmatmul.mubr.bf16.vlgmr.msra.gmra.mxu1 %v886_v24 }
 0x948   :  { %v992_v0 = vpop.f32.mrf.mxu1 }
 0x949   :  { %v993_v26 = vadd.f32 %v1043_v25, %v992_v0 }
 0x94a   :  { %v1176_v27 = vpop.f32.mrf.mxu1 }
 0x94b   :  { %v999_v28 = vadd.f32 %v993_v26, %v1523_v17 }
 0x94c   :  { %v995_v1 = vpop.f32.mrf.mxu1 }
 0x94d   :  { %1001 = vst.msk [vmem:[#allocation2] sm:$0xff] %vm53_vm0, %v999_v28  ;;  %v996_v29 = vadd.f32 %v1043_v25, %v995_v1 }
 0x94e   :  { %v1177_v30 = vpop.f32.mrf.mxu1 }
 0x94f   :  { %v1000_v31 = vadd.f32 %v996_v29, %v1528_v22 }
 0x951   :  { %1002 = vst.msk [vmem:[#allocation2 + $0x8] sm:$0xff] %vm53_vm0, %v1000_v31 }
 0x952   :  { %1274 = shalt.err (!%p1271_p4)
}
 0x953   :  { %s1296_s13 = smov 128  }
 0x954   :  { %1014 = dma.vmem_to_hbm [thread:$0]  %s1009_s20, 256, %s1609_s14, [#allocation3], %s1296_s13, %s1296_s13, %s1292_s17  }
 0x955   :  { %1283 = dma.done.wait [#allocation3], 256  }
 0x956   :  { %1284 = vsyncadd [#allocation3], 4294967040 }
 0x957   :  { %1018 = vsyncpa [#allocation3], 1 }

</bundles_post_ra>
